<compile_context>
chip_gen: v6e
topology: v6e:2x2x1
jax: 0.10.0
libtpu: 0.0.40
codegen_flags: <defaults>
</compile_context>

<pallas_src>
import functools

import jax
import jax.numpy as jnp
from jax.experimental import pallas as pl
from jax.experimental.pallas import tpu as pltpu

LANE = 128     # lane width (last dim)
SUBLANE = 8    # sublane count (second-to-last dim)


def _round_up(x, m):
    return (x + m - 1) // m * m


def _pad2d(a, rows, cols):
    r, c = a.shape
    return jnp.pad(a, ((0, rows - r), (0, cols - c)))


# ----------------------------------------------------------------------------
# Fused Pallas kernel
# ----------------------------------------------------------------------------
def _make_fused_kernel(n_enc, n_dec):
    """Build the fused MultiMLP kernel for a given layer count.

    Ref order: x, (w_i, b_i) x n_enc encoder layers, (w_mt, b_mt),
               (w_j, b_j) x n_dec decoder layers, then outputs sup, mt, ae.
    All operands are pre-padded so feature dims are multiples of 128.
    """

    def kernel(*refs):
        idx = 0
        h = refs[idx][...]
        idx += 1
        enc = []
        for _ in range(n_enc):
            enc.append((refs[idx], refs[idx + 1]))
            idx += 2
        w_mt, b_mt = refs[idx], refs[idx + 1]
        idx += 2
        dec = []
        for _ in range(n_dec):
            dec.append((refs[idx], refs[idx + 1]))
            idx += 2
        sup_ref, mt_ref, ae_ref = refs[idx], refs[idx + 1], refs[idx + 2]

        def linear(x, w_ref, b_ref, relu):
            # Bias folded into the accumulator init; single f32-accum matmul.
            y = b_ref[...] + jnp.dot(
                x, w_ref[...], preferred_element_type=jnp.float32)
            return jnp.maximum(y, 0.0) if relu else y

        # Encoder trunk: Linear -> ReLU (dropout = identity). The shared
        # representation `h` never leaves VMEM.
        for i in range(n_enc - 1):
            w, b = enc[i]
            h = linear(h, w, b, relu=True)

        # Supervised head (no ReLU) and multi-task head (no ReLU).
        w_last, b_last = enc[-1]
        sup_ref[...] = linear(h, w_last, b_last, relu=False).astype(sup_ref.dtype)
        mt_ref[...] = linear(h, w_mt, b_mt, relu=False).astype(mt_ref.dtype)

        # Autoencoder decoder path: Linear -> ReLU per decoder layer.
        ae = h
        for w, b in dec:
            ae = linear(ae, w, b, relu=True)
        ae_ref[...] = ae.astype(ae_ref.dtype)

    return kernel


# ----------------------------------------------------------------------------
# Wrapper: pad operands, run one pallas_call, slice outputs back
# ----------------------------------------------------------------------------
def multimlp_forward(params, x):
    """Replicates MultiMLP.forward (dropout = identity) with one fused kernel."""
    layers = params["layers"]                  # [(w(in,out), b(out,)), ...]
    decoder_layers = params["decoder_layers"]
    mt_w, mt_b = params["multi_task_layer"]

    B, in_dim = x.shape
    Bp = _round_up(max(B, SUBLANE), SUBLANE)

    def pad_layer(w, b):
        din, dout = w.shape
        dinp, doutp = _round_up(din, LANE), _round_up(dout, LANE)
        return _pad2d(w, dinp, doutp), _pad2d(b.reshape(1, dout), 1, doutp)

    x_p = _pad2d(x, Bp, _round_up(in_dim, LANE))
    enc_p = [pad_layer(w, b) for (w, b) in layers]
    mtw_p, mtb_p = pad_layer(mt_w, mt_b)
    dec_p = [pad_layer(w, b) for (w, b) in decoder_layers]

    n_enc, n_dec = len(layers), len(decoder_layers)

    sup_dim = layers[-1][0].shape[1]
    mt_dim = mt_w.shape[1]
    ae_dim = decoder_layers[-1][0].shape[1] if n_dec else in_dim

    inputs = [x_p]
    for w, b in enc_p:
        inputs += [w, b]
    inputs += [mtw_p, mtb_p]
    for w, b in dec_p:
        inputs += [w, b]

    out_shape = (
        jax.ShapeDtypeStruct((Bp, _round_up(sup_dim, LANE)), x.dtype),
        jax.ShapeDtypeStruct((Bp, _round_up(mt_dim, LANE)), x.dtype),
        jax.ShapeDtypeStruct((Bp, _round_up(ae_dim, LANE)), x.dtype),
    )

    fused = pl.pallas_call(
        _make_fused_kernel(n_enc, n_dec),
        out_shape=out_shape,
        in_specs=[pl.BlockSpec(memory_space=pltpu.VMEM)] * len(inputs),
        out_specs=tuple(pl.BlockSpec(memory_space=pltpu.VMEM) for _ in range(3)),
        compiler_params=pltpu.CompilerParams(
            vmem_limit_bytes=32 * 1024 * 1024),
    )
    sup_p, mt_p, ae_p = fused(*inputs)

    # Slice padded, lane-dense slabs back to logical shapes.
    return (sup_p[:B, :sup_dim], mt_p[:B, :mt_dim], ae_p[:B, :ae_dim])


# ----------------------------------------------------------------------------
# Parameter init mirroring torch.nn.Linear defaults (weights stored (in, out))
# ----------------------------------------------------------------------------
def init_linear(key, in_dim, out_dim):
    kw, kb = jax.random.split(key)
    bound = 1.0 / jnp.sqrt(jnp.float32(in_dim))
    w = jax.random.uniform(kw, (in_dim, out_dim), jnp.float32, -bound, bound)
    b = jax.random.uniform(kb, (out_dim,), jnp.float32, -bound, bound)
    return w, b


def init_multimlp_params(key, input_size, num_classes, hidden_size,
                         multi_task_classes):
    if hidden_size == 0 or hidden_size == "":
        hidden_size = []
    elif isinstance(hidden_size, int):
        hidden_size = [hidden_size]
    layer_dims = [input_size] + list(hidden_size) + [num_classes]

    keys = jax.random.split(key, 2 * len(layer_dims) + 2)
    kidx = 0

    layers = []
    for i in range(len(layer_dims) - 1):
        layers.append(init_linear(keys[kidx], layer_dims[i], layer_dims[i + 1]))
        kidx += 1

    decoder_layers = []
    for i in reversed(range(1, len(layer_dims) - 1)):
        decoder_layers.append(
            init_linear(keys[kidx], layer_dims[i], layer_dims[i - 1]))
        kidx += 1

    if not multi_task_classes:
        raise ValueError("Warning: not using multi-task-class layer!")
    multi_task_layer = init_linear(keys[kidx], layer_dims[-2], multi_task_classes)

    return {
        "layers": layers,
        "decoder_layers": decoder_layers,
        "multi_task_layer": multi_task_layer,
    }


# ----------------------------------------------------------------------------
# Pure-jnp reference for correctness checking
# ----------------------------------------------------------------------------
def multimlp_forward_ref(params, x):
    layers = params["layers"]
    decoder_layers = params["decoder_layers"]
    mt_w, mt_b = params["multi_task_layer"]
    for i in range(len(layers) - 1):
        w, b = layers[i]
        x = jnp.maximum(x @ w + b, 0.0)
    w_last, b_last = layers[-1]
    x_sup = x @ w_last + b_last
    x_multitask = x @ mt_w + mt_b
    x_ae = x
    for w, b in decoder_layers:
        x_ae = jnp.maximum(x_ae @ w + b, 0.0)
    return x_sup, x_multitask, x_ae


if __name__ == "__main__":
    key = jax.random.PRNGKey(0)
    k_param, k_x = jax.random.split(key)

    batch = 8
    input_size = 32
    hidden_size = [64, 32]
    num_classes = 8
    multi_task_classes = 4

    params = init_multimlp_params(k_param, input_size, num_classes,
                                  hidden_size, multi_task_classes)
    x = jax.random.normal(k_x, (batch, input_size), jnp.float32)

    fwd = jax.jit(multimlp_forward)
    x_sup, x_mt, x_ae = fwd(params, x)
    jax.block_until_ready((x_sup, x_mt, x_ae))

    # Sanity-check against a pure-JAX reference.
    r_sup, r_mt, r_ae = multimlp_forward_ref(params, x)
    assert x_sup.shape == (batch, num_classes)
    assert x_mt.shape == (batch, multi_task_classes)
    assert x_ae.shape == (batch, input_size)
    assert jnp.allclose(x_sup, r_sup, atol=1e-5, rtol=1e-5)
    assert jnp.allclose(x_mt, r_mt, atol=1e-5, rtol=1e-5)
    assert jnp.allclose(x_ae, r_ae, atol=1e-5, rtol=1e-5)

    print("KERNEL_OK")
</pallas_src>

<mosaic_0001>
module attributes {stable_mosaic.version = 11 : i64} {
  func.func @kernel(%arg0: memref<8x128xf32, #tpu.memory_space<vmem>>, %arg1: memref<128x128xf32, #tpu.memory_space<vmem>>, %arg2: memref<1x128xf32, #tpu.memory_space<vmem>>, %arg3: memref<128x128xf32, #tpu.memory_space<vmem>>, %arg4: memref<1x128xf32, #tpu.memory_space<vmem>>, %arg5: memref<128x128xf32, #tpu.memory_space<vmem>>, %arg6: memref<1x128xf32, #tpu.memory_space<vmem>>, %arg7: memref<128x128xf32, #tpu.memory_space<vmem>>, %arg8: memref<1x128xf32, #tpu.memory_space<vmem>>, %arg9: memref<128x128xf32, #tpu.memory_space<vmem>>, %arg10: memref<1x128xf32, #tpu.memory_space<vmem>>, %arg11: memref<128x128xf32, #tpu.memory_space<vmem>>, %arg12: memref<1x128xf32, #tpu.memory_space<vmem>>, %arg13: memref<8x128xf32, #tpu.memory_space<vmem>>, %arg14: memref<8x128xf32, #tpu.memory_space<vmem>>, %arg15: memref<8x128xf32, #tpu.memory_space<vmem>>) attributes {dimension_semantics = [], scalar_prefetch = 0 : i64, scratch_operands = 0 : i64, tpu.core_type = #tpu.core_type<tc>} {
    %c0 = arith.constant 0 : index
    %c0_0 = arith.constant 0 : index
    %0 = vector.load %arg0[%c0, %c0_0] : memref<8x128xf32, #tpu.memory_space<vmem>>, vector<8x128xf32>
    %c0_1 = arith.constant 0 : index
    %c0_2 = arith.constant 0 : index
    %1 = vector.load %arg2[%c0_1, %c0_2] : memref<1x128xf32, #tpu.memory_space<vmem>>, vector<1x128xf32>
    %c0_3 = arith.constant 0 : index
    %c0_4 = arith.constant 0 : index
    %2 = vector.load %arg1[%c0_3, %c0_4] : memref<128x128xf32, #tpu.memory_space<vmem>>, vector<128x128xf32>
    %cst = arith.constant dense<0.000000e+00> : vector<8x128xf32>
    %3 = tpu.matmul %0, %2, %cst {dimension_numbers = #tpu.dot_dimension_numbers<[1], [0], [0], [1], [0, 0, 1, 1], [], []>} : vector<8x128xf32>, vector<128x128xf32>, vector<8x128xf32> -> vector<8x128xf32>
    %4 = vector.broadcast %1 : vector<1x128xf32> to vector<8x128xf32>
    %5 = arith.addf %4, %3 : vector<8x128xf32>
    %cst_5 = arith.constant 0.000000e+00 : f32
    %6 = vector.broadcast %cst_5 : f32 to vector<8x128xf32>
    %7 = arith.maximumf %5, %6 : vector<8x128xf32>
    %c0_6 = arith.constant 0 : index
    %c0_7 = arith.constant 0 : index
    %8 = vector.load %arg4[%c0_6, %c0_7] : memref<1x128xf32, #tpu.memory_space<vmem>>, vector<1x128xf32>
    %c0_8 = arith.constant 0 : index
    %c0_9 = arith.constant 0 : index
    %9 = vector.load %arg3[%c0_8, %c0_9] : memref<128x128xf32, #tpu.memory_space<vmem>>, vector<128x128xf32>
    %cst_10 = arith.constant dense<0.000000e+00> : vector<8x128xf32>
    %10 = tpu.matmul %7, %9, %cst_10 {dimension_numbers = #tpu.dot_dimension_numbers<[1], [0], [0], [1], [0, 0, 1, 1], [], []>} : vector<8x128xf32>, vector<128x128xf32>, vector<8x128xf32> -> vector<8x128xf32>
    %11 = vector.broadcast %8 : vector<1x128xf32> to vector<8x128xf32>
    %12 = arith.addf %11, %10 : vector<8x128xf32>
    %cst_11 = arith.constant 0.000000e+00 : f32
    %13 = vector.broadcast %cst_11 : f32 to vector<8x128xf32>
    %14 = arith.maximumf %12, %13 : vector<8x128xf32>
    %c0_12 = arith.constant 0 : index
    %c0_13 = arith.constant 0 : index
    %15 = vector.load %arg6[%c0_12, %c0_13] : memref<1x128xf32, #tpu.memory_space<vmem>>, vector<1x128xf32>
    %c0_14 = arith.constant 0 : index
    %c0_15 = arith.constant 0 : index
    %16 = vector.load %arg5[%c0_14, %c0_15] : memref<128x128xf32, #tpu.memory_space<vmem>>, vector<128x128xf32>
    %cst_16 = arith.constant dense<0.000000e+00> : vector<8x128xf32>
    %17 = tpu.matmul %14, %16, %cst_16 {dimension_numbers = #tpu.dot_dimension_numbers<[1], [0], [0], [1], [0, 0, 1, 1], [], []>} : vector<8x128xf32>, vector<128x128xf32>, vector<8x128xf32> -> vector<8x128xf32>
    %18 = vector.broadcast %15 : vector<1x128xf32> to vector<8x128xf32>
    %19 = arith.addf %18, %17 : vector<8x128xf32>
    %c0_17 = arith.constant 0 : index
    %c0_18 = arith.constant 0 : index
    %20 = vector.load %arg13[%c0_17, %c0_18] : memref<8x128xf32, #tpu.memory_space<vmem>>, vector<8x128xf32>
    tpu.vector_store %arg13[%c0_17, %c0_18], %19 {strides = array<i32>} : memref<8x128xf32, #tpu.memory_space<vmem>>, vector<8x128xf32>,
    %c0_19 = arith.constant 0 : index
    %c0_20 = arith.constant 0 : index
    %21 = vector.load %arg8[%c0_19, %c0_20] : memref<1x128xf32, #tpu.memory_space<vmem>>, vector<1x128xf32>
    %c0_21 = arith.constant 0 : index
    %c0_22 = arith.constant 0 : index
    %22 = vector.load %arg7[%c0_21, %c0_22] : memref<128x128xf32, #tpu.memory_space<vmem>>, vector<128x128xf32>
    %cst_23 = arith.constant dense<0.000000e+00> : vector<8x128xf32>
    %23 = tpu.matmul %14, %22, %cst_23 {dimension_numbers = #tpu.dot_dimension_numbers<[1], [0], [0], [1], [0, 0, 1, 1], [], []>} : vector<8x128xf32>, vector<128x128xf32>, vector<8x128xf32> -> vector<8x128xf32>
    %24 = vector.broadcast %21 : vector<1x128xf32> to vector<8x128xf32>
    %25 = arith.addf %24, %23 : vector<8x128xf32>
    %c0_24 = arith.constant 0 : index
    %c0_25 = arith.constant 0 : index
    %26 = vector.load %arg14[%c0_24, %c0_25] : memref<8x128xf32, #tpu.memory_space<vmem>>, vector<8x128xf32>
    tpu.vector_store %arg14[%c0_24, %c0_25], %25 {strides = array<i32>} : memref<8x128xf32, #tpu.memory_space<vmem>>, vector<8x128xf32>,
    %c0_26 = arith.constant 0 : index
    %c0_27 = arith.constant 0 : index
    %27 = vector.load %arg10[%c0_26, %c0_27] : memref<1x128xf32, #tpu.memory_space<vmem>>, vector<1x128xf32>
    %c0_28 = arith.constant 0 : index
    %c0_29 = arith.constant 0 : index
    %28 = vector.load %arg9[%c0_28, %c0_29] : memref<128x128xf32, #tpu.memory_space<vmem>>, vector<128x128xf32>
    %cst_30 = arith.constant dense<0.000000e+00> : vector<8x128xf32>
    %29 = tpu.matmul %14, %28, %cst_30 {dimension_numbers = #tpu.dot_dimension_numbers<[1], [0], [0], [1], [0, 0, 1, 1], [], []>} : vector<8x128xf32>, vector<128x128xf32>, vector<8x128xf32> -> vector<8x128xf32>
    %30 = vector.broadcast %27 : vector<1x128xf32> to vector<8x128xf32>
    %31 = arith.addf %30, %29 : vector<8x128xf32>
    %cst_31 = arith.constant 0.000000e+00 : f32
    %32 = vector.broadcast %cst_31 : f32 to vector<8x128xf32>
    %33 = arith.maximumf %31, %32 : vector<8x128xf32>
    %c0_32 = arith.constant 0 : index
    %c0_33 = arith.constant 0 : index
    %34 = vector.load %arg12[%c0_32, %c0_33] : memref<1x128xf32, #tpu.memory_space<vmem>>, vector<1x128xf32>
    %c0_34 = arith.constant 0 : index
    %c0_35 = arith.constant 0 : index
    %35 = vector.load %arg11[%c0_34, %c0_35] : memref<128x128xf32, #tpu.memory_space<vmem>>, vector<128x128xf32>
    %cst_36 = arith.constant dense<0.000000e+00> : vector<8x128xf32>
    %36 = tpu.matmul %33, %35, %cst_36 {dimension_numbers = #tpu.dot_dimension_numbers<[1], [0], [0], [1], [0, 0, 1, 1], [], []>} : vector<8x128xf32>, vector<128x128xf32>, vector<8x128xf32> -> vector<8x128xf32>
    %37 = vector.broadcast %34 : vector<1x128xf32> to vector<8x128xf32>
    %38 = arith.addf %37, %36 : vector<8x128xf32>
    %cst_37 = arith.constant 0.000000e+00 : f32
    %39 = vector.broadcast %cst_37 : f32 to vector<8x128xf32>
    %40 = arith.maximumf %38, %39 : vector<8x128xf32>
    %c0_38 = arith.constant 0 : index
    %c0_39 = arith.constant 0 : index
    %41 = vector.load %arg15[%c0_38, %c0_39] : memref<8x128xf32, #tpu.memory_space<vmem>>, vector<8x128xf32>
    tpu.vector_store %arg15[%c0_38, %c0_39], %40 {strides = array<i32>} : memref<8x128xf32, #tpu.memory_space<vmem>>, vector<8x128xf32>,
    return
  }
}

</mosaic_0001>

<bundles_post_ra>
// kernel: multimlp_forward.1
= control target key start
LH: loop header
LB: loop body
LE: loop exit
PB: predicated region body
PF: predicated region fallthrough
CT: control target
= control target key end

     0   :  { %21 = vsyncpa [#allocation3], 0  ;;  %v1019_v1 = vmov 0.0   ;;  %vm1020_vm0 = vmmov 0   ;;  %s1529_s0 = inlined_call_operand.vmem [shape: f32[8,128], index: 0, kind: input, shape index: {}]   ;;  %s1530_s1 = inlined_call_operand.vmem [shape: f32[128,128], index: 1, kind: input, shape index: {}]   ;;  %s1531_s2 = inlined_call_operand.vmem [shape: f32[1,128], index: 2, kind: input, shape index: {}]   ;;  %s1532_s3 = inlined_call_operand.vmem [shape: f32[128,128], index: 3, kind: input, shape index: {}]   ;;  %s1533_s4 = inlined_call_operand.vmem [shape: f32[1,128], index: 4, kind: input, shape index: {}]   ;;  %s1534_s5 = inlined_call_operand.vmem [shape: f32[128,128], index: 5, kind: input, shape index: {}]   ;;  %s1535_s6 = inlined_call_operand.vmem [shape: f32[1,128], index: 6, kind: input, shape index: {}]   ;;  %s1536_s7 = inlined_call_operand.vmem [shape: f32[128,128], index: 7, kind: input, shape index: {}]   ;;  %s1537_s8 = inlined_call_operand.vmem [shape: f32[1,128], index: 8, kind: input, shape index: {}]   ;;  %s1538_s9 = inlined_call_operand.vmem [shape: f32[128,128], index: 9, kind: input, shape index: {}]   ;;  %s1539_s10 = inlined_call_operand.vmem [shape: f32[1,128], index: 10, kind: input, shape index: {}]   ;;  %s1540_s11 = inlined_call_operand.vmem [shape: f32[128,128], index: 11, kind: input, shape index: {}]   ;;  %s1541_s12 = inlined_call_operand.vmem [shape: f32[1,128], index: 12, kind: input, shape index: {}]   ;;  %s1542_s13 = inlined_call_operand.hbm [shape: f32[8,128], index: 13, kind: output, shape index: {0}]   ;;  %s1543_s14 = inlined_call_operand.vmem [shape: f32[8,128], index: 14, kind: output, shape index: {1}]   ;;  %s1544_s15 = inlined_call_operand.hbm [shape: f32[8,128], index: 15, kind: output, shape index: {2}]  }
   0x1   :  { %v66_v0 = vld [vmem:[%s1530_s1 + $0x78] sm:$0xff]  ;;  %761 = vmatprep.subr.mxu0 %v1019_v1  ;;  %v65_v2 = vld [vmem:[%s1530_s1 + $0x70] sm:$0xff]  ;;  %793 = vmatprep.mubr.msk.f32.mxu0 %vm1020_vm0, %v1019_v1  ;;  %v64_v3 = vld [vmem:[%s1530_s1 + $0x68] sm:$0xff] }
   0x2   :  { %762 = vmatpush3.msra.mxu0 %v66_v0  ;;  %796 = vmatprep.subr.mxu1 %v1019_v1  ;;  %v63_v4 = vld [vmem:[%s1530_s1 + $0x60] sm:$0xff]  ;;  %v161_v5 = vld [vmem:[%s1532_s3 + $0x78] sm:$0xff]  ;;  %v160_v6 = vld [vmem:[%s1532_s3 + $0x70] sm:$0xff] }
   0x3   :  { %763 = vmatprep.subr.mxu0 %v1019_v1  ;;  %828 = vmatprep.mubr.msk.f32.mxu1 %vm1020_vm0, %v1019_v1  ;;  %v62_v7 = vld [vmem:[%s1530_s1 + $0x58] sm:$0xff]  ;;  %v159_v8 = vld [vmem:[%s1532_s3 + $0x68] sm:$0xff]  ;;  %v61_v9 = vld [vmem:[%s1530_s1 + $0x50] sm:$0xff] }
   0x4   :  { %764 = vmatpush3.msra.mxu0 %v65_v2  ;;  %797 = vmatpush3.msra.mxu1 %v161_v5  ;;  %v158_v10 = vld [vmem:[%s1532_s3 + $0x60] sm:$0xff] }
   0x5   :  { %765 = vmatprep.subr.mxu0 %v1019_v1  ;;  %798 = vmatprep.subr.mxu1 %v1019_v1 }
   0x6   :  { %766 = vmatpush3.msra.mxu0 %v64_v3  ;;  %799 = vmatpush3.msra.mxu1 %v160_v6 }
   0x7   :  { %767 = vmatprep.subr.mxu0 %v1019_v1  ;;  %800 = vmatprep.subr.mxu1 %v1019_v1 }
   0x8   :  { %768 = vmatpush3.msra.mxu0 %v63_v4  ;;  %801 = vmatpush3.msra.mxu1 %v159_v8 }
   0x9   :  { %769 = vmatprep.subr.mxu0 %v1019_v1 }
   0xa   :  { %770 = vmatpush3.msra.mxu0 %v62_v7 }
   0xb   :  { %22 = vsyncpa [#allocation5], 0  ;;  %771 = vmatprep.subr.mxu0 %v1019_v1  ;;  %v60_v11 = vld [vmem:[%s1530_s1 + $0x48] sm:$0xff]  ;;  %802 = vmatprep.subr.mxu1 %v1019_v1  ;;  %v157_v12 = vld [vmem:[%s1532_s3 + $0x58] sm:$0xff] }
   0xc   :  { %772 = vmatpush3.msra.mxu0 %v61_v9  ;;  %803 = vmatpush3.msra.mxu1 %v158_v10  ;;  %v59_v13 = vld [vmem:[%s1530_s1 + $0x40] sm:$0xff]  ;;  %v156_v14 = vld [vmem:[%s1532_s3 + $0x50] sm:$0xff]  ;;  %v58_v15 = vld [vmem:[%s1530_s1 + $0x38] sm:$0xff] }
   0xd   :  { %773 = vmatprep.subr.mxu0 %v1019_v1  ;;  %804 = vmatprep.subr.mxu1 %v1019_v1  ;;  %v155_v16 = vld [vmem:[%s1532_s3 + $0x48] sm:$0xff]  ;;  %v57_v17 = vld [vmem:[%s1530_s1 + $0x30] sm:$0xff]  ;;  %v154_v18 = vld [vmem:[%s1532_s3 + $0x40] sm:$0xff] }
   0xe   :  { %774 = vmatpush3.msra.mxu0 %v60_v11  ;;  %805 = vmatpush3.msra.mxu1 %v157_v12  ;;  %v56_v19 = vld [vmem:[%s1530_s1 + $0x28] sm:$0xff]  ;;  %v153_v20 = vld [vmem:[%s1532_s3 + $0x38] sm:$0xff]  ;;  %v55_v21 = vld [vmem:[%s1530_s1 + $0x20] sm:$0xff] }
   0xf   :  { %775 = vmatprep.subr.mxu0 %v1019_v1  ;;  %806 = vmatprep.subr.mxu1 %v1019_v1  ;;  %v152_v22 = vld [vmem:[%s1532_s3 + $0x30] sm:$0xff]  ;;  %v54_v23 = vld [vmem:[%s1530_s1 + $0x18] sm:$0xff]  ;;  %v151_v24 = vld [vmem:[%s1532_s3 + $0x28] sm:$0xff] }
  0x10   :  { %776 = vmatpush3.msra.mxu0 %v59_v13  ;;  %807 = vmatpush3.msra.mxu1 %v156_v14  ;;  %v53_v25 = vld [vmem:[%s1530_s1 + $0x10] sm:$0xff]  ;;  %v150_v26 = vld [vmem:[%s1532_s3 + $0x20] sm:$0xff]  ;;  %v52_v27 = vld [vmem:[%s1530_s1 + $0x8] sm:$0xff] }
  0x11   :  { %777 = vmatprep.subr.mxu0 %v1019_v1  ;;  %808 = vmatprep.subr.mxu1 %v1019_v1  ;;  %v149_v28 = vld [vmem:[%s1532_s3 + $0x18] sm:$0xff]  ;;  %v51_v29 = vld [vmem:[%s1530_s1] sm:$0xff]  ;;  %v148_v31 = vld [vmem:[%s1532_s3 + $0x10] sm:$0xff] }
  0x12   :  { %778 = vmatpush3.msra.mxu0 %v58_v15  ;;  %809 = vmatpush3.msra.mxu1 %v155_v16  ;;  %v49_v30 = vld [vmem:[%s1529_s0] sm:$0xff]  ;;  %v147_v32 = vld [vmem:[%s1532_s3 + $0x8] sm:$0xff]  ;;  %v256_v34 = vld [vmem:[%s1534_s5 + $0x78] sm:$0xff] }
  0x13   :  { %779 = vmatprep.subr.mxu0 %v1019_v1  ;;  %810 = vmatprep.subr.mxu1 %v1019_v1  ;;  %v146_v33 = vld [vmem:[%s1532_s3] sm:$0xff]  ;;  %v255_v35 = vld [vmem:[%s1534_s5 + $0x70] sm:$0xff]  ;;  %v254_v36 = vld [vmem:[%s1534_s5 + $0x68] sm:$0xff] }
  0x14   :  { %780 = vmatpush3.msra.mxu0 %v57_v17  ;;  %811 = vmatpush3.msra.mxu1 %v154_v18  ;;  %v253_v37 = vld [vmem:[%s1534_s5 + $0x60] sm:$0xff]  ;;  %v252_v38 = vld [vmem:[%s1534_s5 + $0x58] sm:$0xff]  ;;  %v251_v39 = vld [vmem:[%s1534_s5 + $0x50] sm:$0xff] }
  0x15   :  { %781 = vmatprep.subr.mxu0 %v1019_v1  ;;  %812 = vmatprep.subr.mxu1 %v1019_v1  ;;  %v250_v40 = vld [vmem:[%s1534_s5 + $0x48] sm:$0xff]  ;;  %v249_v41 = vld [vmem:[%s1534_s5 + $0x40] sm:$0xff]  ;;  %v248_v42 = vld [vmem:[%s1534_s5 + $0x38] sm:$0xff] }
  0x16   :  { %782 = vmatpush3.msra.mxu0 %v56_v19  ;;  %813 = vmatpush3.msra.mxu1 %v153_v20  ;;  %v247_v43 = vld [vmem:[%s1534_s5 + $0x30] sm:$0xff]  ;;  %v246_v44 = vld [vmem:[%s1534_s5 + $0x28] sm:$0xff]  ;;  %v245_v45 = vld [vmem:[%s1534_s5 + $0x20] sm:$0xff] }
  0x17   :  { %783 = vmatprep.subr.mxu0 %v1019_v1  ;;  %814 = vmatprep.subr.mxu1 %v1019_v1  ;;  %v244_v46 = vld [vmem:[%s1534_s5 + $0x18] sm:$0xff]  ;;  %v243_v47 = vld [vmem:[%s1534_s5 + $0x10] sm:$0xff]  ;;  %v653_v48 = vld [vmem:[%s1531_s2] ss:$0 sm:$0xff] }
  0x18   :  { %784 = vmatpush3.msra.mxu0 %v55_v21  ;;  %815 = vmatpush3.msra.mxu1 %v152_v22  ;;  %v351_v53 = vld [vmem:[%s1536_s7 + $0x78] sm:$0xff]  ;;  %v350_v54 = vld [vmem:[%s1536_s7 + $0x70] sm:$0xff]  ;;  %v349_v55 = vld [vmem:[%s1536_s7 + $0x68] sm:$0xff] }
  0x19   :  { %785 = vmatprep.subr.mxu0 %v1019_v1  ;;  %816 = vmatprep.subr.mxu1 %v1019_v1  ;;  %v348_v56 = vld [vmem:[%s1536_s7 + $0x60] sm:$0xff]  ;;  %v347_v57 = vld [vmem:[%s1536_s7 + $0x58] sm:$0xff]  ;;  %v346_v58 = vld [vmem:[%s1536_s7 + $0x50] sm:$0xff] }
  0x1a   :  { %786 = vmatpush3.msra.mxu0 %v54_v23  ;;  %817 = vmatpush3.msra.mxu1 %v151_v24  ;;  %v345_v59 = vld [vmem:[%s1536_s7 + $0x48] sm:$0xff]  ;;  %v344_v60 = vld [vmem:[%s1536_s7 + $0x40] sm:$0xff]  ;;  %v343_v61 = vld [vmem:[%s1536_s7 + $0x38] sm:$0xff] }
  0x1b   :  { %787 = vmatprep.subr.mxu0 %v1019_v1  ;;  %818 = vmatprep.subr.mxu1 %v1019_v1  ;;  %v342_v62 = vld [vmem:[%s1536_s7 + $0x30] sm:$0xff]  ;;  %v341_v63 = vld [vmem:[%s1536_s7 + $0x28] sm:$0xff]  ;;  %v340_v0 = vld [vmem:[%s1536_s7 + $0x20] sm:$0xff] }
  0x1c   :  { %788 = vmatpush3.msra.mxu0 %v53_v25  ;;  %819 = vmatpush3.msra.mxu1 %v150_v26  ;;  %v339_v2 = vld [vmem:[%s1536_s7 + $0x18] sm:$0xff]  ;;  %v338_v3 = vld [vmem:[%s1536_s7 + $0x10] sm:$0xff]  ;;  %v242_v4 = vld [vmem:[%s1534_s5 + $0x8] sm:$0xff] }
  0x1d   :  { %789 = vmatprep.subr.mxu0 %v1019_v1  ;;  %820 = vmatprep.subr.mxu1 %v1019_v1  ;;  %v337_v5 = vld [vmem:[%s1536_s7 + $0x8] sm:$0xff]  ;;  %v241_v6 = vld [vmem:[%s1534_s5] sm:$0xff]  ;;  %v446_v13 = vld [vmem:[%s1538_s9 + $0x78] sm:$0xff] }
  0x1e   :  { %790 = vmatpush3.msra.mxu0 %v52_v27  ;;  %821 = vmatpush3.msra.mxu1 %v149_v28  ;;  %v336_v7 = vld [vmem:[%s1536_s7] sm:$0xff]  ;;  %v445_v14 = vld [vmem:[%s1538_s9 + $0x70] sm:$0xff]  ;;  %v444_v15 = vld [vmem:[%s1538_s9 + $0x68] sm:$0xff] }
  0x1f   :  { %791 = vmatprep.subr.mxu0 %v1019_v1  ;;  %822 = vmatprep.subr.mxu1 %v1019_v1  ;;  %v654_v8 = vld [vmem:[%s1533_s4] ss:$0 sm:$0xff]  ;;  %v442_v17 = vld [vmem:[%s1538_s9 + $0x58] sm:$0xff]  ;;  %v441_v18 = vld [vmem:[%s1538_s9 + $0x50] sm:$0xff] }
  0x20   :  { %792 = vmatpush3.msra.mxu0 %v51_v29  ;;  %823 = vmatpush3.msra.mxu1 %v148_v31  ;;  %v443_v16 = vld [vmem:[%s1538_s9 + $0x60] sm:$0xff]  ;;  %v440_v19 = vld [vmem:[%s1538_s9 + $0x48] sm:$0xff]  ;;  %v438_v21 = vld [vmem:[%s1538_s9 + $0x38] sm:$0xff] }
  0x21   :  { %794 = vmatmul.mubr.f32.vlgmr.msra.gmra.mxu0 %v49_v30  ;;  %831 = vmatprep.subr.mxu0 %v1019_v1  ;;  %v439_v20 = vld [vmem:[%s1538_s9 + $0x40] sm:$0xff]  ;;  %v437_v22 = vld [vmem:[%s1538_s9 + $0x30] sm:$0xff]  ;;  %v436_v23 = vld [vmem:[%s1538_s9 + $0x28] sm:$0xff] }
  0x22   :  { %863 = vmatprep.mubr.msk.f32.mxu0 %vm1020_vm0, %v1019_v1  ;;  %824 = vmatprep.subr.mxu1 %v1019_v1  ;;  %v435_v24 = vld [vmem:[%s1538_s9 + $0x20] sm:$0xff]  ;;  %v434_v25 = vld [vmem:[%s1538_s9 + $0x18] sm:$0xff]  ;;  %v433_v26 = vld [vmem:[%s1538_s9 + $0x10] sm:$0xff] }
  0x23   :  { %825 = vmatpush3.msra.mxu1 %v147_v32  ;;  %832 = vmatpush3.msra.mxu0 %v256_v34  ;;  %v432_v27 = vld [vmem:[%s1538_s9 + $0x8] sm:$0xff]  ;;  %v431_v28 = vld [vmem:[%s1538_s9] sm:$0xff]  ;;  %v541_v29 = vld [vmem:[%s1540_s11 + $0x78] sm:$0xff] }
  0x24   :  { %826 = vmatprep.subr.mxu1 %v1019_v1  ;;  %833 = vmatprep.subr.mxu0 %v1019_v1  ;;  %v540_v30 = vld [vmem:[%s1540_s11 + $0x70] sm:$0xff]  ;;  %v539_v31 = vld [vmem:[%s1540_s11 + $0x68] sm:$0xff]  ;;  %v538_v32 = vld [vmem:[%s1540_s11 + $0x60] sm:$0xff] }
  0x25   :  { %827 = vmatpush3.msra.mxu1 %v146_v33  ;;  %834 = vmatpush3.msra.mxu0 %v255_v35  ;;  %v537_v33 = vld [vmem:[%s1540_s11 + $0x58] sm:$0xff]  ;;  %v536_v34 = vld [vmem:[%s1540_s11 + $0x50] sm:$0xff]  ;;  %v535_v35 = vld [vmem:[%s1540_s11 + $0x48] sm:$0xff] }
  0x26   :  { %866 = vmatprep.subr.mxu1 %v1019_v1  ;;  %835 = vmatprep.subr.mxu0 %v1019_v1 }
  0x27   :  { %836 = vmatpush3.msra.mxu0 %v254_v36  ;;  %v534_v36 = vld [vmem:[%s1540_s11 + $0x40] sm:$0xff] }
  0x28   :  { %837 = vmatprep.subr.mxu0 %v1019_v1 }
  0x29   :  { %838 = vmatpush3.msra.mxu0 %v253_v37  ;;  %v533_v37 = vld [vmem:[%s1540_s11 + $0x38] sm:$0xff] }
  0x2a   :  { %839 = vmatprep.subr.mxu0 %v1019_v1 }
  0x2b   :  { %840 = vmatpush3.msra.mxu0 %v252_v38  ;;  %v532_v38 = vld [vmem:[%s1540_s11 + $0x30] sm:$0xff] }
  0x2c   :  { %841 = vmatprep.subr.mxu0 %v1019_v1 }
  0x2d   :  { %842 = vmatpush3.msra.mxu0 %v251_v39  ;;  %v531_v39 = vld [vmem:[%s1540_s11 + $0x28] sm:$0xff] }
  0x2e   :  { %843 = vmatprep.subr.mxu0 %v1019_v1 }
  0x2f   :  { %844 = vmatpush3.msra.mxu0 %v250_v40  ;;  %v530_v40 = vld [vmem:[%s1540_s11 + $0x20] sm:$0xff] }
  0x30   :  { %845 = vmatprep.subr.mxu0 %v1019_v1 }
  0x31   :  { %846 = vmatpush3.msra.mxu0 %v249_v41  ;;  %v529_v41 = vld [vmem:[%s1540_s11 + $0x18] sm:$0xff] }
  0x32   :  { %847 = vmatprep.subr.mxu0 %v1019_v1 }
  0x33   :  { %848 = vmatpush3.msra.mxu0 %v248_v42  ;;  %v528_v42 = vld [vmem:[%s1540_s11 + $0x10] sm:$0xff] }
  0x34   :  { %849 = vmatprep.subr.mxu0 %v1019_v1 }
  0x35   :  { %850 = vmatpush3.msra.mxu0 %v247_v43  ;;  %v527_v43 = vld [vmem:[%s1540_s11 + $0x8] sm:$0xff] }
  0x36   :  { %851 = vmatprep.subr.mxu0 %v1019_v1 }
  0x37   :  { %852 = vmatpush3.msra.mxu0 %v246_v44  ;;  %v526_v44 = vld [vmem:[%s1540_s11] sm:$0xff] }
  0x38   :  { %853 = vmatprep.subr.mxu0 %v1019_v1 }
  0x39   :  { %854 = vmatpush3.msra.mxu0 %v245_v45  ;;  %v655_v45 = vld [vmem:[%s1535_s6] ss:$0 sm:$0xff]  ;;  %s1021_s6 = smov [#allocation2]  }
  0x3a   :  { %855 = vmatprep.subr.mxu0 %v1019_v1 }
  0x3b   :  { %856 = vmatpush3.msra.mxu0 %v244_v46  ;;  %v656_v46 = vld [vmem:[%s1537_s8] ss:$0 sm:$0xff]  ;;  %s627_s8 = sshll.u32 %s1021_s6, 4  ;;  %s628_s8 = int_to_ptr.vmem [resolvable:$true] %s627_s8 }
  0x3c   :  { %857 = vmatprep.subr.mxu0 %v1019_v1  ;;  %s975_s18 = scalar_lea.vmem %s628_s8, 128  ;;  %p980_p1 = scmp.lt.s32.totalorder %s628_s8, %s628_s8 }
  0x3d   :  { %858 = vmatpush3.msra.mxu0 %v243_v47  ;;  %p976_p0 = scmp.ne.s32.totalorder %s628_s8, %s975_s18  ;;  %p981_p2 = scmp.lt.s32.totalorder %s975_s18, %s975_s18 }
  0x3e   :  { %859 = vmatprep.subr.mxu0 %v1019_v1 }
  0x3f   :  { %860 = vmatpush3.msra.mxu0 %v242_v4  ;;  %p982_p3 = por %p981_p2, %p980_p1 }
  0x40   :  { %861 = vmatprep.subr.mxu0 %v1019_v1 }
  0x41   :  { %862 = vmatpush3.msra.mxu0 %v241_v6  ;;  %p983_p4 = pnand %p982_p3, %p976_p0 }
  0x42   :  { %901 = vmatprep.subr.mxu0 %v1019_v1 }
  0xe1   :  { %v133_v49 = vpop.f32.mrf.mxu0 }
  0xe2   :  { %v143_v50 = vadd.f32 %v653_v48, %v133_v49 }
  0xe3   :  { %v795_v51 = vpop.f32.mrf.mxu0 }
  0xe4   :  { %v144_v52 = vmax.f32 %v143_v50, 0.0 }
  0xe6   :  { %829 = vmatmul.mubr.f32.vlgmr.msra.gmra.mxu1 %v144_v52 }
  0xe7   :  { %867 = vmatpush3.msra.mxu1 %v351_v53  ;;  %898 = vmatprep.mubr.msk.f32.mxu1 %vm1020_vm0, %v1019_v1 }
  0xe8   :  { %868 = vmatprep.subr.mxu1 %v1019_v1 }
  0xe9   :  { %869 = vmatpush3.msra.mxu1 %v350_v54 }
  0xea   :  { %870 = vmatprep.subr.mxu1 %v1019_v1 }
  0xeb   :  { %871 = vmatpush3.msra.mxu1 %v349_v55 }
  0xec   :  { %872 = vmatprep.subr.mxu1 %v1019_v1 }
  0xed   :  { %873 = vmatpush3.msra.mxu1 %v348_v56 }
  0xee   :  { %874 = vmatprep.subr.mxu1 %v1019_v1 }
  0xef   :  { %875 = vmatpush3.msra.mxu1 %v347_v57 }
  0xf0   :  { %876 = vmatprep.subr.mxu1 %v1019_v1 }
  0xf1   :  { %877 = vmatpush3.msra.mxu1 %v346_v58 }
  0xf2   :  { %878 = vmatprep.subr.mxu1 %v1019_v1 }
  0xf3   :  { %879 = vmatpush3.msra.mxu1 %v345_v59 }
  0xf4   :  { %880 = vmatprep.subr.mxu1 %v1019_v1 }
  0xf5   :  { %881 = vmatpush3.msra.mxu1 %v344_v60 }
  0xf6   :  { %882 = vmatprep.subr.mxu1 %v1019_v1 }
  0xf7   :  { %883 = vmatpush3.msra.mxu1 %v343_v61 }
  0xf8   :  { %884 = vmatprep.subr.mxu1 %v1019_v1 }
  0xf9   :  { %885 = vmatpush3.msra.mxu1 %v342_v62 }
  0xfa   :  { %886 = vmatprep.subr.mxu1 %v1019_v1 }
  0xfb   :  { %887 = vmatpush3.msra.mxu1 %v341_v63 }
  0xfc   :  { %888 = vmatprep.subr.mxu1 %v1019_v1 }
  0xfd   :  { %889 = vmatpush3.msra.mxu1 %v340_v0 }
  0xfe   :  { %890 = vmatprep.subr.mxu1 %v1019_v1 }
  0xff   :  { %891 = vmatpush3.msra.mxu1 %v339_v2 }
 0x100   :  { %892 = vmatprep.subr.mxu1 %v1019_v1 }
 0x101   :  { %893 = vmatpush3.msra.mxu1 %v338_v3 }
 0x102   :  { %894 = vmatprep.subr.mxu1 %v1019_v1 }
 0x103   :  { %895 = vmatpush3.msra.mxu1 %v337_v5 }
 0x104   :  { %896 = vmatprep.subr.mxu1 %v1019_v1 }
 0x105   :  { %897 = vmatpush3.msra.mxu1 %v336_v7 }
 0x106   :  { %936 = vmatprep.subr.mxu1 %v1019_v1 }
 0x1a6   :  { %v228_v9 = vpop.f32.mrf.mxu1 }
 0x1a7   :  { %v238_v10 = vadd.f32 %v654_v8, %v228_v9 }
 0x1a8   :  { %v830_v11 = vpop.f32.mrf.mxu1 }
 0x1a9   :  { %v239_v12 = vmax.f32 %v238_v10, 0.0 }
 0x1ab   :  { %864 = vmatmul.mubr.f32.vlgmr.msra.gmra.mxu0 %v239_v12  ;;  %899 = vmatmul.mubr.f32.vlgmr.msra.gmra.mxu1 %v239_v12 }
 0x1ac   :  { %902 = vmatpush3.msra.mxu0 %v446_v13  ;;  %933 = vmatprep.mubr.msk.f32.mxu0 %vm1020_vm0, %v1019_v1 }
 0x1ad   :  { %903 = vmatprep.subr.mxu0 %v1019_v1  ;;  %968 = vmatprep.mubr.msk.f32.mxu1 %vm1020_vm0, %v1019_v1 }
 0x1ae   :  { %904 = vmatpush3.msra.mxu0 %v445_v14  ;;  %937 = vmatpush3.msra.mxu1 %v541_v29 }
 0x1af   :  { %905 = vmatprep.subr.mxu0 %v1019_v1  ;;  %938 = vmatprep.subr.mxu1 %v1019_v1 }
 0x1b0   :  { %906 = vmatpush3.msra.mxu0 %v444_v15  ;;  %939 = vmatpush3.msra.mxu1 %v540_v30 }
 0x1b1   :  { %907 = vmatprep.subr.mxu0 %v1019_v1  ;;  %940 = vmatprep.subr.mxu1 %v1019_v1 }
 0x1b2   :  { %908 = vmatpush3.msra.mxu0 %v443_v16  ;;  %941 = vmatpush3.msra.mxu1 %v539_v31 }
 0x1b3   :  { %909 = vmatprep.subr.mxu0 %v1019_v1  ;;  %942 = vmatprep.subr.mxu1 %v1019_v1 }
 0x1b4   :  { %910 = vmatpush3.msra.mxu0 %v442_v17  ;;  %943 = vmatpush3.msra.mxu1 %v538_v32 }
 0x1b5   :  { %911 = vmatprep.subr.mxu0 %v1019_v1  ;;  %944 = vmatprep.subr.mxu1 %v1019_v1 }
 0x1b6   :  { %912 = vmatpush3.msra.mxu0 %v441_v18  ;;  %945 = vmatpush3.msra.mxu1 %v537_v33 }
 0x1b7   :  { %913 = vmatprep.subr.mxu0 %v1019_v1  ;;  %946 = vmatprep.subr.mxu1 %v1019_v1 }
 0x1b8   :  { %914 = vmatpush3.msra.mxu0 %v440_v19  ;;  %947 = vmatpush3.msra.mxu1 %v536_v34 }
 0x1b9   :  { %915 = vmatprep.subr.mxu0 %v1019_v1  ;;  %948 = vmatprep.subr.mxu1 %v1019_v1 }
 0x1ba   :  { %916 = vmatpush3.msra.mxu0 %v439_v20  ;;  %949 = vmatpush3.msra.mxu1 %v535_v35 }
 0x1bb   :  { %917 = vmatprep.subr.mxu0 %v1019_v1  ;;  %950 = vmatprep.subr.mxu1 %v1019_v1 }
 0x1bc   :  { %918 = vmatpush3.msra.mxu0 %v438_v21  ;;  %951 = vmatpush3.msra.mxu1 %v534_v36 }
 0x1bd   :  { %919 = vmatprep.subr.mxu0 %v1019_v1  ;;  %952 = vmatprep.subr.mxu1 %v1019_v1 }
 0x1be   :  { %920 = vmatpush3.msra.mxu0 %v437_v22  ;;  %953 = vmatpush3.msra.mxu1 %v533_v37 }
 0x1bf   :  { %921 = vmatprep.subr.mxu0 %v1019_v1  ;;  %954 = vmatprep.subr.mxu1 %v1019_v1 }
 0x1c0   :  { %922 = vmatpush3.msra.mxu0 %v436_v23  ;;  %955 = vmatpush3.msra.mxu1 %v532_v38 }
 0x1c1   :  { %923 = vmatprep.subr.mxu0 %v1019_v1  ;;  %956 = vmatprep.subr.mxu1 %v1019_v1 }
 0x1c2   :  { %924 = vmatpush3.msra.mxu0 %v435_v24  ;;  %957 = vmatpush3.msra.mxu1 %v531_v39 }
 0x1c3   :  { %925 = vmatprep.subr.mxu0 %v1019_v1  ;;  %958 = vmatprep.subr.mxu1 %v1019_v1 }
 0x1c4   :  { %926 = vmatpush3.msra.mxu0 %v434_v25  ;;  %959 = vmatpush3.msra.mxu1 %v530_v40 }
 0x1c5   :  { %927 = vmatprep.subr.mxu0 %v1019_v1  ;;  %960 = vmatprep.subr.mxu1 %v1019_v1 }
 0x1c6   :  { %928 = vmatpush3.msra.mxu0 %v433_v26  ;;  %961 = vmatpush3.msra.mxu1 %v529_v41 }
 0x1c7   :  { %929 = vmatprep.subr.mxu0 %v1019_v1  ;;  %962 = vmatprep.subr.mxu1 %v1019_v1 }
 0x1c8   :  { %930 = vmatpush3.msra.mxu0 %v432_v27  ;;  %963 = vmatpush3.msra.mxu1 %v528_v42 }
 0x1c9   :  { %931 = vmatprep.subr.mxu0 %v1019_v1  ;;  %964 = vmatprep.subr.mxu1 %v1019_v1 }
 0x1ca   :  { %932 = vmatpush3.msra.mxu0 %v431_v28  ;;  %965 = vmatpush3.msra.mxu1 %v527_v43 }
 0x1cb   :  { %934 = vmatmul.mubr.f32.vlgmr.msra.gmra.mxu0 %v239_v12  ;;  %966 = vmatprep.subr.mxu1 %v1019_v1  ;;  %v657_v1 = vld [vmem:[%s1539_s10] ss:$0 sm:$0xff] }
 0x1cc   :  { %967 = vmatpush3.msra.mxu1 %v526_v44 }
 0x26b   :  { %v323_v47 = vpop.f32.mrf.mxu0  ;;  %v418_v48 = vpop.f32.mrf.mxu1 }
 0x26c   :  { %v333_v49 = vadd.f32 %v655_v45, %v323_v47  ;;  %v428_v50 = vadd.f32 %v656_v46, %v418_v48 }
 0x26d   :  { %v865_v51 = vpop.f32.mrf.mxu0  ;;  %v900_v52 = vpop.f32.mrf.mxu1 }
 0x26e   :  { %334 = vst [vmem:[#allocation2] sm:$0xff] %v333_v49  ;;  %429 = vst [vmem:[%s1543_s14] sm:$0xff] %v428_v50 }
 0x28b   :  { %v513_v53 = vpop.f32.mrf.mxu0 }
 0x28c   :  { %v523_v54 = vadd.f32 %v657_v1, %v513_v53 }
 0x28d   :  { %v935_v55 = vpop.f32.mrf.mxu0 }
 0x28e   :  { %v524_v56 = vmax.f32 %v523_v54, 0.0 }
 0x290   :  { %969 = vmatmul.mubr.f32.vlgmr.msra.gmra.mxu1 %v524_v56 }
 0x291   :  { %986 = shalt.err (!%p983_p4)
}
 0x292   :  { %630 = dma.vmem_to_hbm [thread:$0]  %s628_s8, 128, %s1542_s13, [#allocation3]   ;;  %v658_v57 = vld [vmem:[%s1541_s12] ss:$0 sm:$0xff] }
 0x293   :  { %s1022_s19 = smov [#allocation4]  }
 0x294   :  { %s639_s2 = sshll.u32 %s1022_s19, 4  ;;  %s640_s2 = int_to_ptr.vmem [resolvable:$true] %s639_s2 }
 0x295   :  { %s995_s20 = scalar_lea.vmem %s640_s2, 128  ;;  %p1000_p6 = scmp.lt.s32.totalorder %s640_s2, %s640_s2 }
 0x296   :  { %p996_p5 = scmp.ne.s32.totalorder %s640_s2, %s995_s20  ;;  %p1001_p7 = scmp.lt.s32.totalorder %s995_s20, %s995_s20 }
 0x298   :  { %p1002_p8 = por %p1001_p7, %p1000_p6 }
 0x29a   :  { %p1003_p9 = pnand %p1002_p8, %p996_p5 }
 0x350   :  { %v608_v58 = vpop.f32.mrf.mxu1 }
 0x351   :  { %v618_v59 = vadd.f32 %v658_v57, %v608_v58 }
 0x352   :  { %v970_v60 = vpop.f32.mrf.mxu1 }
 0x353   :  { %v619_v61 = vmax.f32 %v618_v59, 0.0 }
 0x355   :  { %620 = vst [vmem:[#allocation4] sm:$0xff] %v619_v61 }
 0x356   :  { %1006 = shalt.err (!%p1003_p9)
}
 0x357   :  { %642 = dma.vmem_to_hbm [thread:$0]  %s640_s2, 128, %s1544_s15, [#allocation5]  }
 0x358   :  { %1015 = dma.done.wait [#allocation3], 128  }
 0x359   :  { %1016 = vsyncadd [#allocation3], 4294967168 }
 0x35a   :  { %1017 = dma.done.wait [#allocation5], 128  }
 0x35b   :  { %1018 = vsyncadd [#allocation5], 4294967168 }
 0x35c   :  { %651 = vsyncpa [#allocation3], 1 }
 0x35d   :  { %652 = vsyncpa [#allocation5], 1 }

</bundles_post_ra>
